<compile_context>
chip_gen: v7x
topology: tpu7x:2x2x1
jax: 0.10.0
libtpu: 0.0.40
codegen_flags: <defaults>
</compile_context>

<pallas_src>
import jax
import jax.numpy as jnp
from jax import lax
from jax.experimental import pallas as pl
from jax.experimental.pallas import tpu as pltpu


def _logreg_kernel(x_ref, w_ref, b_ref, o_ref):
    # x_ref: (TN, F)  w_ref: (1, F)  b_ref: (1, 1) SMEM  o_ref: (1, 1, TN)
    # Contract the feature dim of both operands: (1,F) . (TN,F) -> (1, TN).
    # Lane-dense result row, no explicit transpose of w or x.
    logits = lax.dot_general(
        w_ref[...], x_ref[...],
        dimension_numbers=(((1,), (1,)), ((), ())),
        preferred_element_type=jnp.float32,
    ) + b_ref[0, 0]                                   # (1, TN) f32

    # sigmoid: exp on the EUP, approximate reciprocal also on the EUP slot.
    sig = pl.reciprocal(1.0 + jnp.exp(-logits), approx=True)
    o_ref[0] = sig.astype(o_ref.dtype)                # (1, TN) lane-dense store


def logistic_regression(x, weight, bias, *, block_rows=2048):
    """sigmoid(x @ weight.T + bias); x:(N,F), weight:(1,F), bias:(1,) -> (N,1)."""
    N, F = x.shape
    assert weight.shape == (1, F)

    # Pick the row-tile size: big enough to amortize per-step overhead (~0.35us),
    # small enough that 2x double-buffered x tiles fit comfortably in scoped
    # VMEM on every generation (~8 MiB per buffer -> 16 MiB double-buffered).
    itemsize = jnp.dtype(x.dtype).itemsize
    budget = 8 * 1024 * 1024
    max_rows = max(8, budget // max(F * itemsize, 1))
    TN = min(block_rows, max_rows, N)
    if TN < N:
        if TN >= 128:
            TN = (TN // 128) * 128          # unmasked lane-dense output stores
        else:
            TN = max(8, (TN // 8) * 8)      # sublane-aligned row tile
    G = pl.cdiv(N, TN)                      # tail tile handled by Pallas clamping

    b2d = bias.reshape(1, 1).astype(jnp.float32)

    out = pl.pallas_call(
        _logreg_kernel,
        out_shape=jax.ShapeDtypeStruct((G, 1, TN), jnp.float32),
        grid_spec=pl.GridSpec(
            grid=(G,),
            in_specs=[
                pl.BlockSpec((TN, F), lambda i: (i, 0)),            # x row tile
                pl.BlockSpec((1, F), lambda i: (0, 0)),             # weight (resident)
                pl.BlockSpec((1, 1), lambda i: (0, 0),
                             memory_space=pltpu.SMEM),              # bias scalar
            ],
            out_specs=pl.BlockSpec((1, 1, TN), lambda i: (i, 0, 0)),  # lane-dense row
        ),
        compiler_params=pltpu.CompilerParams(
            dimension_semantics=("parallel",),
            vmem_limit_bytes=32 * 1024 * 1024,   # headroom on v5e, safe on v7x
        ),
        cost_estimate=pl.CostEstimate(
            flops=2 * N * F,
            transcendentals=2 * N,
            bytes_accessed=4 * (N * F + F + N) + 4,
        ),
    )(x, weight, b2d)

    # Cheap layout plumbing on N elements: (G,1,TN) -> (N,1), drop tail padding.
    return out.reshape(G * TN)[:N].reshape(N, 1)


if __name__ == "__main__":
    key = jax.random.PRNGKey(0)
    k_x, k_w, k_b = jax.random.split(key, 3)

    N, F = 64, 32  # batch=64, n_input_features=32

    x = jax.random.normal(k_x, (N, F), dtype=jnp.float32)

    # Deterministic init mimicking nn.Linear(F, 1): U(-1/sqrt(F), 1/sqrt(F))
    bound = 1.0 / jnp.sqrt(jnp.float32(F))
    weight = jax.random.uniform(k_w, (1, F), minval=-bound, maxval=bound,
                                dtype=jnp.float32)
    bias = jax.random.uniform(k_b, (1,), minval=-bound, maxval=bound,
                              dtype=jnp.float32)

    # Small block_rows to exercise the multi-tile pipelined path (4 row tiles).
    y = logistic_regression(x, weight, bias, block_rows=16)
    y = jax.block_until_ready(y)

    # Also exercise the default single-/large-tile path.
    y_big = jax.block_until_ready(logistic_regression(x, weight, bias))

    # Sanity-check against plain-JAX reference (tolerance covers approx recip).
    y_ref = jax.nn.sigmoid(x @ weight.T + bias)
    assert y.shape == (N, 1)
    assert jnp.allclose(y, y_ref, atol=2e-3, rtol=2e-3), "mismatch vs reference"
    assert jnp.allclose(y_big, y_ref, atol=2e-3, rtol=2e-3), "mismatch (big tile)"

    print("KERNEL_OK")
</pallas_src>

<mosaic_0001>
module attributes {stable_mosaic.version = 11 : i64} {
  func.func @_logreg_kernel(%arg0: i32, %arg1: memref<16x32xf32, #tpu.memory_space<vmem>>, %arg2: memref<1x32xf32, #tpu.memory_space<vmem>>, %arg3: memref<1x1xf32, #tpu.memory_space<smem>>, %arg4: memref<1x1x16xf32, #tpu.memory_space<vmem>>) attributes {dimension_semantics = [#tpu.dimension_semantics<parallel>], iteration_bounds = array<i64: 4>, scalar_prefetch = 0 : i64, scratch_operands = 0 : i64, tpu.core_type = #tpu.core_type<tc>, window_params = [{transform_indices = @transform_0, window_bounds = array<i64: 16, 32>}, {pipeline_mode = #tpu.pipeline_mode<synchronous>, transform_indices = @transform_1, window_bounds = array<i64: 1, 32>}, {transform_indices = @transform_2, window_bounds = array<i64: 1, 1>}, {transform_indices = @transform_3, window_bounds = array<i64: 1, 1, 16>}]} {
    %c0 = arith.constant 0 : index
    %c0_0 = arith.constant 0 : index
    %0 = vector.load %arg2[%c0, %c0_0] : memref<1x32xf32, #tpu.memory_space<vmem>>, vector<1x32xf32>
    %c0_1 = arith.constant 0 : index
    %c0_2 = arith.constant 0 : index
    %1 = vector.load %arg1[%c0_1, %c0_2] : memref<16x32xf32, #tpu.memory_space<vmem>>, vector<16x32xf32>
    %cst = arith.constant dense<0.000000e+00> : vector<1x16xf32>
    %2 = tpu.matmul %0, %1, %cst {dimension_numbers = #tpu.dot_dimension_numbers<[1], [1], [0], [0], [0, 0, 1, 0], [], []>} : vector<1x32xf32>, vector<16x32xf32>, vector<1x16xf32> -> vector<1x16xf32>
    %c0_3 = arith.constant 0 : index
    %c0_4 = arith.constant 0 : index
    %3 = memref.load %arg3[%c0_3, %c0_4] : memref<1x1xf32, #tpu.memory_space<smem>>
    %4 = vector.broadcast %3 : f32 to vector<1x16xf32>
    %5 = arith.addf %2, %4 : vector<1x16xf32>
    %cst_5 = arith.constant 0.000000e+00 : f32
    %6 = vector.broadcast %cst_5 : f32 to vector<1x16xf32>
    %7 = arith.subf %6, %5 : vector<1x16xf32>
    %8 = math.exp %7 : vector<1x16xf32>
    %cst_6 = arith.constant 1.000000e+00 : f32
    %9 = vector.broadcast %cst_6 : f32 to vector<1x16xf32>
    %10 = arith.addf %9, %8 : vector<1x16xf32>
    %11 = tpu.reciprocal %10 {approx = true} : vector<1x16xf32> -> vector<1x16xf32>
    %c0_7 = arith.constant 0 : index
    %c0_8 = arith.constant 0 : index
    %c0_9 = arith.constant 0 : index
    %12 = vector.load %arg4[%c0_7, %c0_8, %c0_9] : memref<1x1x16xf32, #tpu.memory_space<vmem>>, vector<1x1x16xf32>
    %13 = vector.shape_cast %12 : vector<1x1x16xf32> to vector<1x16xf32>
    %14 = vector.shape_cast %11 : vector<1x16xf32> to vector<1x1x16xf32>
    tpu.vector_store %arg4[%c0_7, %c0_8, %c0_9], %14 {strides = array<i32>} : memref<1x1x16xf32, #tpu.memory_space<vmem>>, vector<1x1x16xf32>,
    return
  }
  func.func @transform_0(%arg0: i32) -> (i32, i32) {
    %c0_i32 = arith.constant 0 : i32
    %c0_i32_0 = arith.constant 0 : i32
    return %arg0, %c0_i32 : i32, i32
  }
  func.func @transform_1(%arg0: i32) -> (i32, i32) {
    %c0_i32 = arith.constant 0 : i32
    %c0_i32_0 = arith.constant 0 : i32
    %c0_i32_1 = arith.constant 0 : i32
    return %c0_i32, %c0_i32_0 : i32, i32
  }
  func.func @transform_2(%arg0: i32) -> (i32, i32) {
    %c0_i32 = arith.constant 0 : i32
    %c0_i32_0 = arith.constant 0 : i32
    %c0_i32_1 = arith.constant 0 : i32
    return %c0_i32, %c0_i32_0 : i32, i32
  }
  func.func @transform_3(%arg0: i32) -> (i32, i32, i32) {
    %c0_i32 = arith.constant 0 : i32
    %c0_i32_0 = arith.constant 0 : i32
    %c0_i32_1 = arith.constant 0 : i32
    return %arg0, %c0_i32, %c0_i32_0 : i32, i32, i32
  }
}

</mosaic_0001>

<bundles_post_ra>
// kernel: tpu_custom_call.1
= control target key start
LH: loop header
LB: loop body
LE: loop exit
PB: predicated region body
PF: predicated region fallthrough
CT: control target
= control target key end

     0   :  { %s596_s0 = inlined_call_operand.vmem [shape: f32[64,32], index: 0, kind: input, shape index: {}]   ;;  %s597_s1 = inlined_call_operand.vmem [shape: f32[1,32], index: 1, kind: input, shape index: {}]   ;;  %s598_s2 = inlined_call_operand.<no memory space> [shape: f32[1,1], index: 2, kind: input, shape index: {}]   ;;  %s599_s3 = inlined_call_operand.hbm [shape: f32[4,1,16], index: 3, kind: output, shape index: {}]  }
   0x1   :  { %8 = sst [smem:[#allocation2]] %s598_s2 }
   0x2   :  { %9 = vsyncpa [#allocation4], 0 }
   0x3   :  { %11 = vsyncpa [#allocation4 + $0x1], 0  ;;  %s494_s14 = smov 0   ;;  %s496_s15 = smov 0  }
   0x4   :  { %s498_s16 = smov 0   ;;  %s500_s17 = smov 0  }
   0x5 LB: > { %s515_s2 = sadd.s32 4294967295, %s465_s17   ;;  %s331_s18 = sadd.s32 4294967294, %s465_s17   ;;  %s465_s17 = sphi %s500_s17, %s605_s17   ;;  %s461_s16 = sphi %s498_s16, %s604_s16   ;;  %s457_s15 = sphi %s496_s15, %s603_s15   ;;  %s453_s14 = sphi %s494_s14, %s602_s14  }
   0x6   : > { %s519_s19 = sadd.s32 1, %s465_s17   ;;  %s92_s20 = sadd.s32 1, %s461_s16 }
   0x7   : > { %s89_s21 = ssub.s32 %s465_s17, %s519_s19  ;;  %p102_p0 = scmp.ne.s32.totalorder %s461_s16, %s457_s15 }
   0x8   : > { %p90_p1 = scmp.eq.s32.totalorder %s89_s21, 0  ;;  %p103_p2 = scmp.eq.s32.totalorder %s515_s2, 3 }
   0x9   : > { %p108_p3 = scmp.ne.s32.totalorder %s457_s15, %s453_s14  ;;  %p109_p4 = scmp.eq.s32.totalorder %s331_s18, 3 }
   0xa   : > { %s530_s22 = scalar_select %p90_p1, %s461_s16, %s92_s20  }
   0xb   : > { %p532_p5 = por %p103_p2, %p102_p0  ;;  %p536_p6 = por %p109_p4, %p108_p3 }
   0xc   : > { %p334_p7 = scmp.ge.s32.totalorder %s465_s17, 1  ;;  %p142_p8 = scmp.lt.s32.totalorder %s465_s17, 5 }
   0xe   : > { %p143_p9 = pnand %p334_p7, %p142_p8 }
   0xf   : > { %s335_s25 = sshll.u32 (!%p143_p9), %s515_s2, 1  ;;  %v467_v0 = vmov (!%p143_p9), 0.0|0.0   ;;  %vm468_vm0 = vmmov (!%p143_p9), 0   ;;  %v469_v1 = vmov (!%p143_p9), 0.0   ;;  %vm176_vm1 = vcmask (!%p143_p9), 261120   ;;  %s174_s5 = sld [smem:[#allocation2]] (!%p143_p9) }
  0x10   : > { %146 = sbr.rel (%p143_p9) target bundleno = 292 (0x124), region = 32  ;;  %353 = vmatprep.subr.bf16.mxu0 (!%p143_p9), %v467_v0  ;;  %p166_p10 = scmp.lt.s32.totalorder (!%p143_p9), %s335_s25, 7  ;;  %350 = vmatprep.mubr.msk.f32.mxu0 (!%p143_p9), %vm468_vm0, %v469_v1  ;;  %vm355_vm2 = vmpackc.low (!%p143_p9), %vm176_vm1, %vm176_vm1  ;;  %v171_v5 = vld [vmem:[%s597_s1] sm:$0x1] (!%p143_p9)  ;;  %vm261_vm3 = vcmask (!%p143_p9), 122880  }
  0x11   : > { %s163_s6 = sand.u32 (!%p143_p9), 1, %s457_s15   ;;  %s340_s7 = sshll.u32 (!%p143_p9), %s515_s2, 4 }
  0x12   : > { %s164_s8 = scalar_lea.vmem (!%p143_p9), [#allocation3], %s163_s6  ;;  %s554_s12 = scalar_lea.hbm (!%p143_p9), %s599_s3, %s340_s7 }
  0x13   : > { %s276_s9 = sshll.u32 (!%p143_p9), %s164_s8, 4  ;;  %s264_s13 = scalar_lea.sflag (!%p143_p9), [#allocation4], %s163_s6  ;;  %s556_s9 = int_to_ptr.vmem [resolvable:$true] %s276_s9 }
  0x14   : > { %s403_s18 = scalar_lea.vmem (!%p143_p9), %s556_s9, 16  ;;  %s470_s2 = smov (!%p143_p9), [#allocation3]  }
  0x15   : > { %v175_v6 = vstv (!%p143_p9), %s174_s5  ;;  %p404_p11 = scmp.ne.s32.totalorder (!%p143_p9), %s556_s9, %s403_s18  ;;  %s407_s20 = sshll.u32 (!%p143_p9), %s470_s2, 4  ;;  %s408_s20 = int_to_ptr.vmem [resolvable:$false] %s407_s20 }
  0x16   : > { %s409_s21 = scalar_lea.vmem (!%p143_p9), %s408_s20, 32  ;;  %p410_p0 = scmp.lt.s32.totalorder (!%p143_p9), %s556_s9, %s408_s20 }
  0x17   : > { %s607_s25 = smov (!%p166_p10, %s335_s25), 7  ;;  %p405_p12 = pnand %p404_p11, %p532_p5 }
  0x18   : > { %s336_s26 = sshll.u32 %s607_s25, 3  ;;  %p411_p1 = scmp.lt.s32.totalorder %s409_s21, %s403_s18 }
  0x19   : > { %s169_s29 = scalar_lea.vmem %s596_s0, %s336_s26  ;;  %p406_p13 = pneg %p405_p12 }
  0x1a   : > { %v172_v2 = vld [vmem:[%s169_s29] sm:$0xff]  ;;  %v173_v3 = vld [vmem:[%s169_s29 + $0x8] sm:$0xff]  ;;  %p412_p2 = por %p411_p1, %p410_p0 }
  0x1b   : > { %v354_v4 = vpack.c.bf16 %v173_v3, %v172_v2 }
  0x1c   : > { %p413_p3 = pnand %p412_p2, %p406_p13 }
  0x1d   : > { %356 = vmatpush3.bf16.xpose.msk.msra.mxu0 %vm355_vm2, %v354_v4 }
  0x24   : > { %351 = vmatmul.mubr.msk.f32.vlgmr.msra.gmra.mrb[0].mxu0 %vm176_vm1, %v171_v5 }
  0xf7   : > { %v252_v7 = vpop.f32.mrb[0].mxu0 }
  0xf8   : > { %v253_v8 = vadd.f32 %v252_v7, %v175_v6  ;;  %v352_v9 = vpop.f32.mrb[1].mxu0 }
  0xfa   : > { %v256_v10 = vsub.f32 0.0, %v253_v8 }
  0xfc   : > { %v257_v11 = vmul.f32 1.442695, %v256_v10 }
  0xfe   : > { %399 = vpow2.f32 %v257_v11 }
 0x108   : > { %v400_v12 = vpop.eup %399 }
 0x109   : > { %v259_v13 = vadd.f32 1.0, %v400_v12 }
 0x10b   : > { %401 = vrcp.f32 %v259_v13 }
 0x115   : > { %v402_v14 = vpop.eup %401 }
 0x116   : > { %262 = vst.msk [vmem:[%s164_s8] sm:$0x1] %vm261_vm3, %v402_v14 }
 0x117   : > { %416 = shalt.err (!%p413_p3)
}
 0x118   : > { %s417_s25 = scalar_lea.hbm %s554_s12, 16  ;;  %s421_s28 = scalar_lea.hbm %s599_s3, 64 }
 0x119   : > { %p418_p4 = scmp.ne.s32.totalorder %s554_s12, %s417_s25  ;;  %p422_p9 = scmp.lt.u32.totalorder %s554_s12, %s599_s3 }
 0x11a   : > { %p423_p10 = scmp.lt.u32.totalorder %s421_s28, %s417_s25  ;;  %p425_p12 = scmp.lt.u32.totalorder %s417_s25, %s554_s12 }
 0x11b   : > { %p419_p7 = pnand %p418_p4, %p532_p5 }
 0x11c   : > { %p424_p11 = por %p423_p10, %p422_p9 }
 0x11d   : > { %p420_p8 = pneg %p419_p7 }
 0x11e   : > { %p426_p13 = por %p425_p12, %p424_p11 }
 0x120   : > { %p427_p0 = pnand %p426_p13, %p420_p8 }
 0x122   : > { %430 = shalt.err (!%p427_p0)
}
 0x123   : > { %357 = dma.vmem_to_hbm [thread:$0]  (%p532_p5), %s556_s9, 16, %s554_s12, %s264_s13  }
 0x124 PF: > { %p363_p1 = scmp.ge.s32.totalorder %s465_s17, 2  ;;  %s288_s4 = sand.u32 1, %s453_s14  }
 0x125   : > { %s289_s5 = scalar_lea.sflag [#allocation4], %s288_s4 }
 0x126   : > { %p360_p2 = pnand %p363_p1, %p536_p6 }
 0x128   : > { %448 = dma.done.wait (!%p360_p2), %s289_s5, 16  }
 0x129   : > { %450 = vsyncadd (!%p360_p2), %s289_s5, 4294967280  ;;  %p14_p3 = scmp.ge.s32.totalorder %s519_s19, 6   ;;  %s602_s14 = smov %s457_s15 }
 0x12a   : > { %s603_s15 = smov %s461_s16  ;;  %s604_s16 = smov %s530_s22 }
 0x12b   : > { %s605_s17 = smov %s519_s19  ;;  %16 = sbr.rel (!%p14_p3) target bundleno = 5 (0x5), region = 67 }
 0x132   :  { %293 = vsyncpa [#allocation4], 1 }
 0x133   :  { %295 = vsyncpa [#allocation4 + $0x1], 1 }

</bundles_post_ra>
